<compile_context>
chip_gen: v7x
topology: tpu7x:2x2x1
jax: 0.10.0
libtpu: 0.0.40
codegen_flags: <defaults>
</compile_context>

<pallas_src>
import functools

import jax
import jax.numpy as jnp
from jax import lax
from jax.experimental import pallas as pl
from jax.experimental.pallas import tpu as pltpu

_LANE = 128          # TPU lane width
_CHUNK_TARGET = 512  # in-kernel column chunk (keeps the chain vreg-resident)


def _cnn_kernel(x_ref, w1_ref, w2_ref, w3_ref, w4_ref, bias_ref, o_ref, *,
                chunk, n_chunks):
    """One (C_in, tile_cols) column-tile of the fused 4-layer 1x1-conv chain.

    x_ref:    (C_in, tile_cols)  pixels on the lane axis (lane-dense).
    wK_ref:   (C_out_k, C_in_k)  conv weights, eval-mode BN folded in.
    bias_ref: (max_C, 4)         column k = bias of layer k (zero-padded).
    o_ref:    (C_out, tile_cols)
    """
    w1 = w1_ref[...]
    w2 = w2_ref[...]
    w3 = w3_ref[...]
    w4 = w4_ref[...]
    bias = bias_ref[...]
    b1 = bias[0:w1.shape[0], 0:1]
    b2 = bias[0:w2.shape[0], 1:2]
    b3 = bias[0:w3.shape[0], 2:3]
    b4 = bias[0:w4.shape[0], 3:4]

    def chain(x):
        # Layer 1..3: conv1x1 (+ folded BN of the previous layer) -> ReLU
        h = jnp.dot(w1, x, preferred_element_type=jnp.float32) + b1
        h = jnp.maximum(h, 0.0)
        h = jnp.dot(w2, h, preferred_element_type=jnp.float32) + b2
        h = jnp.maximum(h, 0.0)
        h = jnp.dot(w3, h, preferred_element_type=jnp.float32) + b3
        h = jnp.maximum(h, 0.0)
        # Layer 4: conv1x1 (with BN3 folded) -> Sigmoid
        h = jnp.dot(w4, h, preferred_element_type=jnp.float32) + b4
        return jax.nn.sigmoid(h).astype(o_ref.dtype)

    if n_chunks == 1:
        o_ref[...] = chain(x_ref[...])
    else:
        # Chunk the lane axis so intermediates stay in vregs; unrolled so the
        # LLO scheduler can co-issue MXU/VPU/EUP work across chunks.
        def body(i, carry):
            col = pl.multiple_of(i * chunk, _LANE)
            o_ref[:, pl.ds(col, chunk)] = chain(x_ref[:, pl.ds(col, chunk)])
            return carry

        lax.fori_loop(0, n_chunks, body, None, unroll=True)


def _pick_tile_cols(total_cols, max_tile_cols, min_tiles):
    """Pick a lane-tile width: multiple of 128, <= max, >= min_tiles tiles."""
    max_tile_cols = max(_LANE, (max_tile_cols // _LANE) * _LANE)
    if total_cols <= _LANE:
        return total_cols  # full-dim tile (always layout-legal)
    return min(max_tile_cols, _LANE * pl.cdiv(total_cols, _LANE * min_tiles))


def _pick_chunk(tile_cols):
    for c in (_CHUNK_TARGET, 256, _LANE):
        if tile_cols % c == 0:
            return c
    return tile_cols


@functools.partial(jax.jit, static_argnames=("max_tile_cols",))
def cnn_forward(x_nchw, params, max_tile_cols=8192):
    """Forward pass matching the PyTorch CNN module (eval-mode BatchNorm).

    x_nchw: (N, C_in, H, W) float32.
    params: dict of conv weights/biases and BN gamma/beta/mean/var.
    """
    N, C_in, H, W = x_nchw.shape
    eps = 1e-5

    # ---- weights: PyTorch (C_out, C_in, 1, 1) -> (C_out, C_in).
    w1 = params["w1"][:, :, 0, 0]; b1 = params["b1"]
    w2 = params["w2"][:, :, 0, 0]; b2 = params["b2"]
    w3 = params["w3"][:, :, 0, 0]; b3 = params["b3"]
    w4 = params["w4"][:, :, 0, 0]; b4 = params["b4"]

    # ---- fold eval-mode BN_k (applied AFTER ReLU_k) into conv_{k+1}:
    #      W @ (s*h + t) + b  ==  (W * s) @ h + (W @ t + b)
    def fold_bn_into_next(w_next, b_next, gamma, beta, mean, var):
        s = gamma / jnp.sqrt(var + eps)
        t = beta - mean * s
        return w_next * s[None, :], w_next @ t + b_next

    w2, b2 = fold_bn_into_next(w2, b2, params["g1"], params["be1"], params["m1"], params["v1"])
    w3, b3 = fold_bn_into_next(w3, b3, params["g2"], params["be2"], params["m2"], params["v2"])
    w4, b4 = fold_bn_into_next(w4, b4, params["g3"], params["be3"], params["m3"], params["v3"])

    C_hidden = w1.shape[0]
    C_out = w4.shape[0]

    # ---- pack the 4 biases into one (max_C, 4) column table.
    max_c = max(C_hidden, C_out)

    def _col(b):
        return jnp.pad(b, (0, max_c - b.shape[0]))

    bias_pack = jnp.stack([_col(b1), _col(b2), _col(b3), _col(b4)], axis=1)

    HW = H * W
    # Lane-dense output: if H*W is not a multiple of 128 (masked vst.msk
    # territory), merge the batch into the lane axis with one XLA transpose.
    merge_batch = (HW % _LANE != 0)

    if merge_batch:
        total_cols = N * HW
        x_cols = jnp.transpose(x_nchw.reshape(N, C_in, HW), (1, 0, 2)).reshape(C_in, total_cols)
        tile_cols = _pick_tile_cols(total_cols, max_tile_cols, min_tiles=2)
        n_col_tiles = pl.cdiv(total_cols, tile_cols)
        grid = (n_col_tiles,)
        x_spec = pl.BlockSpec((C_in, tile_cols), lambda j: (0, j))
        out_spec = pl.BlockSpec((C_out, tile_cols), lambda j: (0, j))
        out_shape = jax.ShapeDtypeStruct((C_out, total_cols), jnp.float32)

        def full_spec(shape):
            return pl.BlockSpec(shape, lambda j: (0,) * len(shape))

        dim_sem = ("parallel",)
    else:
        # Pure reshape, no transpose / no pad: (N, C, H*W).
        total_cols = HW
        x_cols = x_nchw.reshape(N, C_in, HW)
        # Ensure >= 2 parallel grid iterations (feeds both v7x TensorCores).
        tile_cols = _pick_tile_cols(total_cols, max_tile_cols,
                                    min_tiles=2 if N == 1 else 1)
        n_col_tiles = pl.cdiv(total_cols, tile_cols)
        grid = (N, n_col_tiles)
        x_spec = pl.BlockSpec((None, C_in, tile_cols), lambda n, j: (n, 0, j))
        out_spec = pl.BlockSpec((None, C_out, tile_cols), lambda n, j: (n, 0, j))
        out_shape = jax.ShapeDtypeStruct((N, C_out, HW), jnp.float32)

        def full_spec(shape):
            return pl.BlockSpec(shape, lambda n, j: (0,) * len(shape))

        dim_sem = ("parallel", "parallel")

    chunk = _pick_chunk(tile_cols)
    n_chunks = tile_cols // chunk

    # Advisory cost estimate: this shape is HBM-bound, not MXU-bound.
    n_pixels = N * HW
    flops = 2 * n_pixels * (C_in * C_hidden + 2 * C_hidden * C_hidden + C_hidden * C_out)
    bytes_accessed = 4 * n_pixels * (C_in + C_out) + 4 * (
        w1.size + w2.size + w3.size + w4.size + bias_pack.size)
    cost = pl.CostEstimate(flops=flops,
                           transcendentals=n_pixels * C_out,
                           bytes_accessed=bytes_accessed)

    out = pl.pallas_call(
        functools.partial(_cnn_kernel, chunk=chunk, n_chunks=n_chunks),
        out_shape=out_shape,
        grid_spec=pltpu.PrefetchScalarGridSpec(
            num_scalar_prefetch=0,
            grid=grid,
            in_specs=[
                x_spec,
                full_spec(w1.shape),
                full_spec(w2.shape),
                full_spec(w3.shape),
                full_spec(w4.shape),
                full_spec(bias_pack.shape),
            ],
            out_specs=out_spec,
        ),
        compiler_params=pltpu.CompilerParams(
            dimension_semantics=dim_sem,
            vmem_limit_bytes=32 * 1024 * 1024),
        cost_estimate=cost,
    )(x_cols, w1, w2, w3, w4, bias_pack)

    if merge_batch:
        return jnp.transpose(out.reshape(C_out, N, H, W), (1, 0, 2, 3))
    return out.reshape(N, C_out, H, W)


def init_params(key, in_features, hidden_features, out_features):
    """Deterministic synthetic parameters (shapes match the PyTorch module)."""
    ks = jax.random.split(key, 16)

    def conv(k, c_out, c_in):
        bound = 1.0 / jnp.sqrt(c_in)
        kw, kb = jax.random.split(k)
        w = jax.random.uniform(kw, (c_out, c_in, 1, 1), jnp.float32, -bound, bound)
        b = jax.random.uniform(kb, (c_out,), jnp.float32, -bound, bound)
        return w, b

    def bn(k, c):
        kg, kb, km, kv = jax.random.split(k, 4)
        gamma = 1.0 + 0.1 * jax.random.normal(kg, (c,), jnp.float32)
        beta = 0.1 * jax.random.normal(kb, (c,), jnp.float32)
        mean = 0.1 * jax.random.normal(km, (c,), jnp.float32)
        var = jnp.abs(1.0 + 0.1 * jax.random.normal(kv, (c,), jnp.float32))
        return gamma, beta, mean, var

    w1, b1 = conv(ks[0], hidden_features, in_features)
    g1, be1, m1, v1 = bn(ks[1], hidden_features)
    w2, b2 = conv(ks[2], hidden_features, hidden_features)
    g2, be2, m2, v2 = bn(ks[3], hidden_features)
    w3, b3 = conv(ks[4], hidden_features, hidden_features)
    g3, be3, m3, v3 = bn(ks[5], hidden_features)
    w4, b4 = conv(ks[6], out_features, hidden_features)

    return dict(w1=w1, b1=b1, g1=g1, be1=be1, m1=m1, v1=v1,
                w2=w2, b2=b2, g2=g2, be2=be2, m2=m2, v2=v2,
                w3=w3, b3=b3, g3=g3, be3=be3, m3=m3, v3=v3,
                w4=w4, b4=b4)


def _reference_forward(x_nchw, params, eps=1e-5):
    """Pure-JAX reference (same math as the PyTorch module, eval-mode BN)."""
    def conv1x1(x, w, b):
        return jnp.einsum("nchw,oc->nohw", x, w[:, :, 0, 0]) + b[None, :, None, None]

    def bn(x, g, be, m, v):
        return (x - m[None, :, None, None]) / jnp.sqrt(v[None, :, None, None] + eps) \
            * g[None, :, None, None] + be[None, :, None, None]

    p = params
    h = jax.nn.relu(conv1x1(x_nchw, p["w1"], p["b1"]))
    h = bn(h, p["g1"], p["be1"], p["m1"], p["v1"])
    h = jax.nn.relu(conv1x1(h, p["w2"], p["b2"]))
    h = bn(h, p["g2"], p["be2"], p["m2"], p["v2"])
    h = jax.nn.relu(conv1x1(h, p["w3"], p["b3"]))
    h = bn(h, p["g3"], p["be3"], p["m3"], p["v3"])
    h = conv1x1(h, p["w4"], p["b4"])
    return jax.nn.sigmoid(h)


if __name__ == "__main__":
    key = jax.random.PRNGKey(0)
    k_x, k_p = jax.random.split(key)

    N, C_in, H, W = 2, 4, 16, 16
    hidden_features, out_features = 32, 4

    x = jax.random.normal(k_x, (N, C_in, H, W), jnp.float32)
    params = init_params(k_p, C_in, hidden_features, out_features)

    out = jax.block_until_ready(cnn_forward(x, params))
    ref = jax.block_until_ready(_reference_forward(x, params))
    assert out.shape == (N, out_features, H, W), out.shape
    assert jnp.allclose(out, ref, atol=1e-5, rtol=1e-5), \
        float(jnp.max(jnp.abs(out - ref)))

    # Exercise the merged-batch lane-dense path (H*W not a multiple of 128,
    # last column tile overhangs -> masked/dropped OOB writes).
    x_odd = jax.random.normal(k_x, (2, C_in, 9, 9), jnp.float32)
    out_odd = jax.block_until_ready(cnn_forward(x_odd, params))
    ref_odd = _reference_forward(x_odd, params)
    assert jnp.allclose(out_odd, ref_odd, atol=1e-5, rtol=1e-5), \
        float(jnp.max(jnp.abs(out_odd - ref_odd)))

    # Exercise the in-kernel chunked (unrolled fori_loop) path: wide lane tile.
    x_big = jax.random.normal(k_x, (2, C_in, 64, 64), jnp.float32)
    out_big = jax.block_until_ready(cnn_forward(x_big, params))
    ref_big = _reference_forward(x_big, params)
    assert jnp.allclose(out_big, ref_big, atol=1e-5, rtol=1e-5), \
        float(jnp.max(jnp.abs(out_big - ref_big)))

    print("KERNEL_OK")
</pallas_src>

<mosaic_0001>
module attributes {stable_mosaic.version = 11 : i64} {
  func.func @_cnn_kernel(%arg0: i32, %arg1: i32, %arg2: memref<1x4x256xf32, #tpu.memory_space<vmem>>, %arg3: memref<32x4xf32, #tpu.memory_space<vmem>>, %arg4: memref<32x32xf32, #tpu.memory_space<vmem>>, %arg5: memref<32x32xf32, #tpu.memory_space<vmem>>, %arg6: memref<4x32xf32, #tpu.memory_space<vmem>>, %arg7: memref<32x4xf32, #tpu.memory_space<vmem>>, %arg8: memref<1x4x256xf32, #tpu.memory_space<vmem>>) attributes {dimension_semantics = [#tpu.dimension_semantics<parallel>, #tpu.dimension_semantics<parallel>], iteration_bounds = array<i64: 2, 1>, scalar_prefetch = 0 : i64, scratch_operands = 0 : i64, tpu.core_type = #tpu.core_type<tc>, window_params = [{transform_indices = @transform_0, window_bounds = array<i64: 1, 4, 256>}, {pipeline_mode = #tpu.pipeline_mode<synchronous>, transform_indices = @transform_1, window_bounds = array<i64: 32, 4>}, {pipeline_mode = #tpu.pipeline_mode<synchronous>, transform_indices = @transform_2, window_bounds = array<i64: 32, 32>}, {pipeline_mode = #tpu.pipeline_mode<synchronous>, transform_indices = @transform_3, window_bounds = array<i64: 32, 32>}, {pipeline_mode = #tpu.pipeline_mode<synchronous>, transform_indices = @transform_4, window_bounds = array<i64: 4, 32>}, {pipeline_mode = #tpu.pipeline_mode<synchronous>, transform_indices = @transform_5, window_bounds = array<i64: 32, 4>}, {transform_indices = @transform_6, window_bounds = array<i64: 1, 4, 256>}]} {
    %c0 = arith.constant 0 : index
    %c0_0 = arith.constant 0 : index
    %0 = vector.load %arg3[%c0, %c0_0] : memref<32x4xf32, #tpu.memory_space<vmem>>, vector<32x4xf32>
    %c0_1 = arith.constant 0 : index
    %c0_2 = arith.constant 0 : index
    %1 = vector.load %arg4[%c0_1, %c0_2] : memref<32x32xf32, #tpu.memory_space<vmem>>, vector<32x32xf32>
    %c0_3 = arith.constant 0 : index
    %c0_4 = arith.constant 0 : index
    %2 = vector.load %arg5[%c0_3, %c0_4] : memref<32x32xf32, #tpu.memory_space<vmem>>, vector<32x32xf32>
    %c0_5 = arith.constant 0 : index
    %c0_6 = arith.constant 0 : index
    %3 = vector.load %arg6[%c0_5, %c0_6] : memref<4x32xf32, #tpu.memory_space<vmem>>, vector<4x32xf32>
    %c0_7 = arith.constant 0 : index
    %c0_8 = arith.constant 0 : index
    %4 = vector.load %arg7[%c0_7, %c0_8] : memref<32x4xf32, #tpu.memory_space<vmem>>, vector<32x4xf32>
    %5 = vector.extract_strided_slice %4 {offsets = [0, 0], sizes = [32, 1], strides = [1, 1]} : vector<32x4xf32> to vector<32x1xf32>
    %6 = vector.extract_strided_slice %4 {offsets = [0, 1], sizes = [32, 1], strides = [1, 1]} : vector<32x4xf32> to vector<32x1xf32>
    %7 = vector.extract_strided_slice %4 {offsets = [0, 2], sizes = [32, 1], strides = [1, 1]} : vector<32x4xf32> to vector<32x1xf32>
    %8 = vector.extract_strided_slice %4 {offsets = [0, 3], sizes = [4, 1], strides = [1, 1]} : vector<32x4xf32> to vector<4x1xf32>
    %c0_9 = arith.constant 0 : index
    %c0_10 = arith.constant 0 : index
    %c0_11 = arith.constant 0 : index
    %9 = vector.load %arg2[%c0_9, %c0_10, %c0_11] : memref<1x4x256xf32, #tpu.memory_space<vmem>>, vector<1x4x256xf32>
    %10 = vector.shape_cast %9 : vector<1x4x256xf32> to vector<4x256xf32>
    %cst = arith.constant dense<0.000000e+00> : vector<32x256xf32>
    %11 = tpu.matmul %0, %10, %cst {dimension_numbers = #tpu.dot_dimension_numbers<[1], [0], [0], [1], [0, 0, 1, 1], [], []>} : vector<32x4xf32>, vector<4x256xf32>, vector<32x256xf32> -> vector<32x256xf32>
    %12 = vector.broadcast %5 : vector<32x1xf32> to vector<32x256xf32>
    %13 = arith.addf %11, %12 : vector<32x256xf32>
    %cst_12 = arith.constant 0.000000e+00 : f32
    %14 = vector.broadcast %cst_12 : f32 to vector<32x256xf32>
    %15 = arith.maximumf %13, %14 : vector<32x256xf32>
    %cst_13 = arith.constant dense<0.000000e+00> : vector<32x256xf32>
    %16 = tpu.matmul %1, %15, %cst_13 {dimension_numbers = #tpu.dot_dimension_numbers<[1], [0], [0], [1], [0, 0, 1, 1], [], []>} : vector<32x32xf32>, vector<32x256xf32>, vector<32x256xf32> -> vector<32x256xf32>
    %17 = vector.broadcast %6 : vector<32x1xf32> to vector<32x256xf32>
    %18 = arith.addf %16, %17 : vector<32x256xf32>
    %cst_14 = arith.constant 0.000000e+00 : f32
    %19 = vector.broadcast %cst_14 : f32 to vector<32x256xf32>
    %20 = arith.maximumf %18, %19 : vector<32x256xf32>
    %cst_15 = arith.constant dense<0.000000e+00> : vector<32x256xf32>
    %21 = tpu.matmul %2, %20, %cst_15 {dimension_numbers = #tpu.dot_dimension_numbers<[1], [0], [0], [1], [0, 0, 1, 1], [], []>} : vector<32x32xf32>, vector<32x256xf32>, vector<32x256xf32> -> vector<32x256xf32>
    %22 = vector.broadcast %7 : vector<32x1xf32> to vector<32x256xf32>
    %23 = arith.addf %21, %22 : vector<32x256xf32>
    %cst_16 = arith.constant 0.000000e+00 : f32
    %24 = vector.broadcast %cst_16 : f32 to vector<32x256xf32>
    %25 = arith.maximumf %23, %24 : vector<32x256xf32>
    %cst_17 = arith.constant dense<0.000000e+00> : vector<4x256xf32>
    %26 = tpu.matmul %3, %25, %cst_17 {dimension_numbers = #tpu.dot_dimension_numbers<[1], [0], [0], [1], [0, 0, 1, 1], [], []>} : vector<4x32xf32>, vector<32x256xf32>, vector<4x256xf32> -> vector<4x256xf32>
    %27 = vector.broadcast %8 : vector<4x1xf32> to vector<4x256xf32>
    %28 = arith.addf %26, %27 : vector<4x256xf32>
    %29 = arith.negf %28 : vector<4x256xf32>
    %30 = math.exp %29 : vector<4x256xf32>
    %cst_18 = arith.constant 1.000000e+00 : f32
    %31 = vector.broadcast %cst_18 : f32 to vector<4x256xf32>
    %32 = arith.addf %31, %30 : vector<4x256xf32>
    %33 = arith.divf %31, %32 : vector<4x256xf32>
    %c0_19 = arith.constant 0 : index
    %c0_20 = arith.constant 0 : index
    %c0_21 = arith.constant 0 : index
    %34 = vector.load %arg8[%c0_19, %c0_20, %c0_21] : memref<1x4x256xf32, #tpu.memory_space<vmem>>, vector<1x4x256xf32>
    %35 = vector.shape_cast %34 : vector<1x4x256xf32> to vector<4x256xf32>
    %36 = vector.shape_cast %33 : vector<4x256xf32> to vector<1x4x256xf32>
    tpu.vector_store %arg8[%c0_19, %c0_20, %c0_21], %36 {strides = array<i32>} : memref<1x4x256xf32, #tpu.memory_space<vmem>>, vector<1x4x256xf32>,
    return
  }
  func.func @transform_0(%arg0: i32, %arg1: i32) -> (i32, i32, i32) {
    %c0_i32 = arith.constant 0 : i32
    %c0_i32_0 = arith.constant 0 : i32
    return %arg0, %c0_i32, %arg1 : i32, i32, i32
  }
  func.func @transform_1(%arg0: i32, %arg1: i32) -> (i32, i32) {
    %c0_i32 = arith.constant 0 : i32
    %c0_i32_0 = arith.constant 0 : i32
    %c0_i32_1 = arith.constant 0 : i32
    return %c0_i32, %c0_i32_0 : i32, i32
  }
  func.func @transform_2(%arg0: i32, %arg1: i32) -> (i32, i32) {
    %c0_i32 = arith.constant 0 : i32
    %c0_i32_0 = arith.constant 0 : i32
    %c0_i32_1 = arith.constant 0 : i32
    return %c0_i32, %c0_i32_0 : i32, i32
  }
  func.func @transform_3(%arg0: i32, %arg1: i32) -> (i32, i32) {
    %c0_i32 = arith.constant 0 : i32
    %c0_i32_0 = arith.constant 0 : i32
    %c0_i32_1 = arith.constant 0 : i32
    return %c0_i32, %c0_i32_0 : i32, i32
  }
  func.func @transform_4(%arg0: i32, %arg1: i32) -> (i32, i32) {
    %c0_i32 = arith.constant 0 : i32
    %c0_i32_0 = arith.constant 0 : i32
    %c0_i32_1 = arith.constant 0 : i32
    return %c0_i32, %c0_i32_0 : i32, i32
  }
  func.func @transform_5(%arg0: i32, %arg1: i32) -> (i32, i32) {
    %c0_i32 = arith.constant 0 : i32
    %c0_i32_0 = arith.constant 0 : i32
    %c0_i32_1 = arith.constant 0 : i32
    return %c0_i32, %c0_i32_0 : i32, i32
  }
  func.func @transform_6(%arg0: i32, %arg1: i32) -> (i32, i32, i32) {
    %c0_i32 = arith.constant 0 : i32
    %c0_i32_0 = arith.constant 0 : i32
    return %arg0, %c0_i32, %arg1 : i32, i32, i32
  }
}

</mosaic_0001>

<bundles_post_ra>
// kernel: cnn_forward.1
= control target key start
LH: loop header
LB: loop body
LE: loop exit
PB: predicated region body
PF: predicated region fallthrough
CT: control target
= control target key end

     0   :  { %s1044_s21 = smov 0   ;;  %s1046_s22 = smov 0   ;;  %s1178_s0 = inlined_call_operand.vmem [shape: f32[2,4,256], index: 0, kind: input, shape index: {}]   ;;  %s1179_s1 = inlined_call_operand.vmem [shape: f32[32,4], index: 1, kind: input, shape index: {}]   ;;  %s1180_s2 = inlined_call_operand.vmem [shape: f32[32,32], index: 2, kind: input, shape index: {}]   ;;  %s1181_s3 = inlined_call_operand.vmem [shape: f32[32,32], index: 3, kind: input, shape index: {}]   ;;  %s1182_s4 = inlined_call_operand.vmem [shape: f32[4,32], index: 4, kind: input, shape index: {}]   ;;  %s1183_s5 = inlined_call_operand.vmem [shape: f32[32,4], index: 5, kind: input, shape index: {}]   ;;  %s1184_s6 = inlined_call_operand.vmem [shape: f32[2,4,256], index: 6, kind: output, shape index: {}]  }
   0x1   :  { %s1048_s23 = smov 0  }
   0x2 LB: > { %s28_s24 = sadd.s32 1, %s998_s22  ;;  %p883_p0 = scmp.ge.s32.totalorder %s1002_s23, 1  ;;  %s1002_s23 = sphi %s1048_s23, %s16_s23   ;;  %s998_s22 = sphi %s1046_s22, %s1186_s22   ;;  %s994_s21 = sphi %s1044_s21, %s1185_s21  }
   0x3   : > { %p30_p1 = scmp.ge.s32.totalorder %s28_s24, 2  ;;  %p233_p2 = scmp.lt.s32.totalorder %s1002_s23, 3 }
   0x5   : > { %s1188_s24 = smov (%p30_p1, %s28_s24), 0  ;;  %p234_p3 = pnand %p883_p0, %p233_p2 }
   0x6   : > { %p272_p4 = scmp.lt.s32.totalorder (!%p234_p3), %s994_s21, 1  ;;  %v1004_v0 = vmov (!%p234_p3), 0.0   ;;  %v1067_v1 = vld [vmem:[%s1183_s5] sm:$0xff] (!%p234_p3)  ;;  %v1005_v2 = vmov (!%p234_p3), 0   ;;  %v1074_v3 = vld [vmem:[%s1183_s5 + $0x10] sm:$0xff] (!%p234_p3)  ;;  %v1082_v4 = vld [vmem:[%s1183_s5 + $0x8] sm:$0xff] (!%p234_p3) }
   0x7   : > { %237 = sbr.rel (%p234_p3) target bundleno = 967 (0x3c7), region = 44  ;;  %413 = vmatprep.mubr.f32.mxu0 (!%p234_p3), %v1004_v0  ;;  %425 = vmatprep.mubr.f32.mxu1 (!%p234_p3), %v1004_v0  ;;  %v1087_v5 = vld [vmem:[%s1183_s5 + $0x18] sm:$0xff] (!%p234_p3)  ;;  %vm344_vm0 = vcmask (!%p234_p3), 1043456   ;;  %v291_v8 = vld [vmem:[%s1179_s1] sm:$0xff] (!%p234_p3)  ;;  %vm331_vm1 = vcmask (!%p234_p3), 31744   ;;  %v293_v9 = vld [vmem:[%s1179_s1 + $0x10] sm:$0xff] (!%p234_p3) }
   0x8   : > { %964 = vset.pattern.permute.xlu0 (!%p234_p3), %v1005_v2  ;;  %965 = vset.pattern.permute.xlu1 (!%p234_p3), %v1005_v2  ;;  %v292_v10 = vld [vmem:[%s1179_s1 + $0x8] sm:$0xff] (!%p234_p3)  ;;  %v294_v11 = vld [vmem:[%s1179_s1 + $0x18] sm:$0xff] (!%p234_p3)  ;;  %v1006_v12 = vmov (!%p234_p3), 1   ;;  %v295_v45 = vld [vmem:[%s1180_s2] sm:$0xff] (!%p234_p3)  ;;  %vm462_vm2 = vcmask (!%p234_p3), 261120   ;;  %v1007_v49 = vmov (!%p234_p3), 2  }
   0x9   : > { %311 = vperm.xlu0 (!%p234_p3), %964, %v1067_v1   ;;  %321 = vperm.xlu1 (!%p234_p3), %965, %v1074_v3   ;;  %v296_v46 = vld [vmem:[%s1180_s2 + $0x8] sm:$0xff] (!%p234_p3)  ;;  %v297_v47 = vld [vmem:[%s1180_s2 + $0x10] sm:$0xff] (!%p234_p3)  ;;  %v298_v48 = vld [vmem:[%s1180_s2 + $0x18] sm:$0xff] (!%p234_p3) }
   0xd   : > { %316 = vperm.xlu0 (!%p234_p3), %964, %v1082_v4   ;;  %326 = vperm.xlu1 (!%p234_p3), %965, %v1087_v5  }
   0xe   : > { %s1190_s21 = smov (!%p272_p4, %s994_s21), 1 }
   0xf   : > { %s907_s29 = sshll.u32 %s1190_s21, 3 }
  0x10   : > { %s279_s12 = scalar_lea.vmem %s1178_s0, %s907_s29  ;;  %s289_s26 = scalar_lea.vmem %s1184_s6, %s907_s29 }
  0x11   : > { %v308_v6 = vld [vmem:[%s279_s12] sm:$0xff]  ;;  %966 = vset.pattern.permute.xlu0 %v1006_v12  ;;  %967 = vset.pattern.permute.xlu1 %v1006_v12 }
  0x12   : > { %v330_v7 = vcombine.high %v308_v6, %v308_v6  ;;  %447 = vperm.xlu0 %966, %v1067_v1   ;;  %451 = vperm.xlu1 %967, %v1082_v4  }
  0x14   : > { %888 = vmatprep.subr.msk.mxu0 %vm344_vm0, %v330_v7  ;;  %933 = vmatprep.subr.msk.mxu1 %vm344_vm0, %v330_v7 }
  0x15   : > { %889 = vmatpush1.msk.msra.mxu0 %vm344_vm0, %v308_v6  ;;  %934 = vmatpush1.msk.msra.mxu1 %vm344_vm0, %v308_v6 }
  0x16   : > { %890 = vmatmul.mubr.msk.f32.vlgmr.msra.gmra.mrb[0].mxu0 %vm331_vm1, %v291_v8  ;;  %892 = vmatmul.mubr.msk.f32.vlgmr.msra.gmra.mrb[0].mxu1 %vm331_vm1, %v293_v9 }
  0x17   : > { %419 = vmatprep.mubr.f32.mxu0 %v1004_v0  ;;  %431 = vmatprep.mubr.f32.mxu1 %v1004_v0 }
  0x18   : > { %455 = vperm.xlu1 %967, %v1074_v3   ;;  %459 = vperm.xlu0 %966, %v1087_v5  }
  0x1a   : > { %891 = vmatmul.mubr.msk.f32.gmra.mrb[2].mxu0 %vm331_vm1, %v292_v10  ;;  %893 = vmatmul.mubr.msk.f32.gmra.mrb[2].mxu1 %vm331_vm1, %v294_v11 }
  0x1b   : > { %539 = vmatprep.mubr.f32.mxu1 %v1004_v0  ;;  %664 = vmatprep.mubr.f32.mxu0 %v1004_v0 }
  0x1c   : > { %968 = vset.pattern.permute.xlu1 %v1007_v49  ;;  %969 = vset.pattern.permute.xlu0 %v1007_v49 }
  0x1d   : > { %573 = vperm.xlu1 %968, %v1067_v1   ;;  %577 = vperm.xlu0 %969, %v1082_v4  }
  0x21   : > { %581 = vperm.xlu1 %968, %v1074_v3  }
  0x25   : > { %585 = vperm.xlu1 %968, %v1087_v5  }
  0x88   : > { %v322_v13 = vpop.permute.xlu1 %321  ;;  %v312_v14 = vpop.permute.xlu0 %311 }
  0x8c   : > { %v327_v21 = vpop.permute.xlu1 %326  ;;  %v317_v23 = vpop.permute.xlu0 %316 }
  0x91   : > { %v448_v50 = vpop.permute.xlu0 %447  ;;  %v452_v53 = vpop.permute.xlu1 %451 }
  0x97   : > { %v456_v2 = vpop.permute.xlu1 %455  ;;  %v460_v8 = vpop.permute.xlu0 %459 }
  0xe9   : > { %v415_v15 = vpop.f32.mrb[0].mxu0  ;;  %v427_v16 = vpop.f32.mrb[0].mxu1 }
  0xea   : > { %v417_v17 = vpop.f32.mrb[1].mxu0  ;;  %v428_v18 = vadd.f32 %v427_v16, %v322_v13  ;;  %v429_v19 = vpop.f32.mrb[1].mxu1  ;;  %v416_v22 = vadd.f32 %v415_v15, %v312_v14 }
  0xeb   : > { %v430_v20 = vadd.f32 %v429_v19, %v322_v13  ;;  %v418_v24 = vadd.f32 %v417_v17, %v312_v14 }
  0xec   : > { %v442_v27 = vmax.f32 %v428_v18, 0.0  ;;  %v438_v35 = vmax.f32 %v416_v22, 0.0  ;;  %v301_v22 = vld [vmem:[%s1181_s3 + $0x10] sm:$0xff] }
  0xed   : > { %v421_v25 = vpop.f32.mrb[2].mxu0  ;;  %v433_v26 = vpop.f32.mrb[2].mxu1  ;;  %v443_v32 = vmax.f32 %v430_v20, 0.0  ;;  %v439_v38 = vmax.f32 %v418_v24, 0.0  ;;  %v299_v20 = vld [vmem:[%s1181_s3] sm:$0xff]  ;;  %v1008_v24 = vmov 3  }
  0xee   : > { %v422_v28 = vadd.f32 %v421_v25, %v317_v23  ;;  %v434_v29 = vadd.f32 %v433_v26, %v327_v21  ;;  %v423_v30 = vpop.f32.mrb[3].mxu0  ;;  %v435_v31 = vpop.f32.mrb[3].mxu1  ;;  %970 = vset.pattern.permute.xlu0 %v1008_v24 }
  0xef   : > { %v424_v33 = vadd.f32 %v423_v30, %v317_v23  ;;  %v436_v34 = vadd.f32 %v435_v31, %v327_v21  ;;  %v300_v21 = vld [vmem:[%s1181_s3 + $0x8] sm:$0xff]  ;;  %v302_v23 = vld [vmem:[%s1181_s3 + $0x18] sm:$0xff]  ;;  %698 = vperm.xlu0 %970, %v1067_v1   ;;  %v574_v25 = vpop.permute.xlu1 %573 }
  0xf0   : > { %v440_v36 = vmax.f32 %v422_v28, 0.0  ;;  %v444_v37 = vmax.f32 %v434_v29, 0.0  ;;  %v578_v28 = vpop.permute.xlu0 %577 }
  0xf1   : > { %v441_v39 = vmax.f32 %v424_v33, 0.0  ;;  %v445_v40 = vmax.f32 %v436_v34, 0.0 }
  0xf2   : > { %v911_v41 = vpack.c.bf16 %v440_v36, %v438_v35  ;;  %v915_v42 = vpack.c.bf16 %v444_v37, %v442_v27 }
  0xf3   : > { %v909_v43 = vpack.c.bf16 %v441_v39, %v439_v38  ;;  %v913_v44 = vpack.c.bf16 %v445_v40, %v443_v32 }
  0xf5   : > { %910 = vmatprep.subr.bf16.mxu1 %v909_v43 }
  0xf6   : > { %912 = vmatpush1.bf16.msra.mxu1 %v911_v41 }
  0xf7   : > { %914 = vmatprep.subr.bf16.mxu1 %v913_v44 }
  0xfa   : > { %916 = vmatpush1.bf16.msra.mxu1 %v915_v42 }
  0xfd   : > { %894 = vmatmul.mubr.msk.f32.vlgmr.msra.gmra.mrb[4].mxu1 %vm462_vm2, %v295_v45 }
  0xfe   : > { %545 = vmatprep.mubr.f32.mxu1 %v1004_v0 }
 0x101   : > { %895 = vmatmul.mubr.msk.f32.gmra.mrb[6].mxu1 %vm462_vm2, %v296_v46 }
 0x102   : > { %551 = vmatprep.mubr.f32.mxu1 %v1004_v0 }
 0x105   : > { %896 = vmatmul.mubr.msk.f32.gmra.mrb[8].mxu1 %vm462_vm2, %v297_v47 }
 0x106   : > { %557 = vmatprep.mubr.f32.mxu1 %v1004_v0 }
 0x109   : > { %897 = vmatmul.mubr.msk.f32.gmra.mrb[10].mxu1 %vm462_vm2, %v298_v48 }
 0x10a   : > { %768 = vmatprep.mubr.f32.mxu1 %v1004_v0 }
 0x1d0   : > { %v541_v51 = vpop.f32.mrb[4].mxu1 }
 0x1d1   : > { %v543_v52 = vpop.f32.mrb[5].mxu1  ;;  %v542_v54 = vadd.f32 %v541_v51, %v448_v50 }
 0x1d2   : > { %v544_v55 = vadd.f32 %v543_v52, %v448_v50 }
 0x1d3   : > { %v564_v60 = vmax.f32 %v542_v54, 0.0 }
 0x1d4   : > { %v547_v56 = vpop.f32.mrb[6].mxu1  ;;  %v565_v62 = vmax.f32 %v544_v55, 0.0  ;;  %v303_v55 = vld [vmem:[%s1182_s4] sm:$0xf] }
 0x1d5   : > { %v548_v57 = vadd.f32 %v547_v56, %v452_v53  ;;  %v549_v58 = vpop.f32.mrb[7].mxu1  ;;  %v699_v56 = vpop.permute.xlu0 %698 }
 0x1d6   : > { %v550_v59 = vadd.f32 %v549_v58, %v452_v53 }
 0x1d7   : > { %v566_v61 = vmax.f32 %v548_v57, 0.0 }
 0x1d8   : > { %v567_v63 = vmax.f32 %v550_v59, 0.0  ;;  %v553_v4 = vpop.f32.mrb[8].mxu1 }
 0x1d9   : > { %v919_v6 = vpack.c.bf16 %v566_v61, %v564_v60  ;;  %v555_v3 = vpop.f32.mrb[9].mxu1  ;;  %v554_v5 = vadd.f32 %v553_v4, %v456_v2 }
 0x1da   : > { %v917_v7 = vpack.c.bf16 %v567_v63, %v565_v62  ;;  %v556_v9 = vadd.f32 %v555_v3, %v456_v2 }
 0x1db   : > { %v568_v14 = vmax.f32 %v554_v5, 0.0 }
 0x1dc   : > { %v559_v10 = vpop.f32.mrb[10].mxu1  ;;  %918 = vmatprep.subr.bf16.mxu0 %v917_v7  ;;  %v569_v16 = vmax.f32 %v556_v9, 0.0 }
 0x1dd   : > { %v560_v11 = vadd.f32 %v559_v10, %v460_v8  ;;  %v561_v12 = vpop.f32.mrb[11].mxu1  ;;  %920 = vmatpush1.bf16.msra.mxu0 %v919_v6 }
 0x1de   : > { %v562_v13 = vadd.f32 %v561_v12, %v460_v8 }
 0x1df   : > { %v570_v15 = vmax.f32 %v560_v11, 0.0 }
 0x1e0   : > { %v571_v17 = vmax.f32 %v562_v13, 0.0 }
 0x1e1   : > { %v923_v18 = vpack.c.bf16 %v570_v15, %v568_v14 }
 0x1e2   : > { %v921_v19 = vpack.c.bf16 %v571_v17, %v569_v16 }
 0x1e4   : > { %922 = vmatprep.subr.bf16.mxu0 %v921_v19 }
 0x1e5   : > { %924 = vmatpush1.bf16.msra.mxu0 %v923_v18 }
 0x1e8   : > { %898 = vmatmul.mubr.msk.f32.vlgmr.msra.gmra.mrb[4].mxu0 %vm462_vm2, %v299_v20 }
 0x1e9   : > { %670 = vmatprep.mubr.f32.mxu0 %v1004_v0 }
 0x1ec   : > { %899 = vmatmul.mubr.msk.f32.gmra.mrb[6].mxu0 %vm462_vm2, %v300_v21 }
 0x1ed   : > { %676 = vmatprep.mubr.f32.mxu0 %v1004_v0 }
 0x1f0   : > { %900 = vmatmul.mubr.msk.f32.gmra.mrb[8].mxu0 %vm462_vm2, %v301_v22 }
 0x1f1   : > { %682 = vmatprep.mubr.f32.mxu0 %v1004_v0  ;;  %v582_v0 = vpop.permute.xlu1 %581 }
 0x1f4   : > { %901 = vmatmul.mubr.msk.f32.gmra.mrb[10].mxu0 %vm462_vm2, %v302_v23 }
 0x1f5   : > { %v586_v43 = vpop.permute.xlu1 %585 }
 0x2bb   : > { %v666_v26 = vpop.f32.mrb[4].mxu0 }
 0x2bc   : > { %v668_v27 = vpop.f32.mrb[5].mxu0  ;;  %v667_v29 = vadd.f32 %v666_v26, %v574_v25 }
 0x2bd   : > { %v669_v30 = vadd.f32 %v668_v27, %v574_v25 }
 0x2be   : > { %v689_v35 = vmax.f32 %v667_v29, 0.0 }
 0x2bf   : > { %v672_v31 = vpop.f32.mrb[6].mxu0  ;;  %v690_v37 = vmax.f32 %v669_v30, 0.0 }
 0x2c0   : > { %v673_v32 = vadd.f32 %v672_v31, %v578_v28  ;;  %v674_v33 = vpop.f32.mrb[7].mxu0 }
 0x2c1   : > { %v675_v34 = vadd.f32 %v674_v33, %v578_v28 }
 0x2c2   : > { %v691_v36 = vmax.f32 %v673_v32, 0.0 }
 0x2c3   : > { %v692_v38 = vmax.f32 %v675_v34, 0.0  ;;  %v678_v39 = vpop.f32.mrb[8].mxu0 }
 0x2c4   : > { %v927_v40 = vpack.c.bf16 %v691_v36, %v689_v35  ;;  %v680_v41 = vpop.f32.mrb[9].mxu0  ;;  %v679_v1 = vadd.f32 %v678_v39, %v582_v0 }
 0x2c5   : > { %v925_v42 = vpack.c.bf16 %v692_v38, %v690_v37  ;;  %v681_v44 = vadd.f32 %v680_v41, %v582_v0 }
 0x2c6   : > { %v693_v49 = vmax.f32 %v679_v1, 0.0 }
 0x2c7   : > { %v684_v45 = vpop.f32.mrb[10].mxu0  ;;  %926 = vmatprep.subr.bf16.mxu1 %v925_v42  ;;  %v694_v51 = vmax.f32 %v681_v44, 0.0 }
 0x2c8   : > { %v685_v46 = vadd.f32 %v684_v45, %v586_v43  ;;  %v686_v47 = vpop.f32.mrb[11].mxu0  ;;  %928 = vmatpush1.bf16.msra.mxu1 %v927_v40 }
 0x2c9   : > { %v687_v48 = vadd.f32 %v686_v47, %v586_v43 }
 0x2ca   : > { %v695_v50 = vmax.f32 %v685_v46, 0.0 }
 0x2cb   : > { %v696_v52 = vmax.f32 %v687_v48, 0.0 }
 0x2cc   : > { %v931_v53 = vpack.c.bf16 %v695_v50, %v693_v49 }
 0x2cd   : > { %v929_v54 = vpack.c.bf16 %v696_v52, %v694_v51 }
 0x2cf   : > { %930 = vmatprep.subr.bf16.mxu1 %v929_v54 }
 0x2d0   : > { %932 = vmatpush1.bf16.msra.mxu1 %v931_v53 }
 0x2d3   : > { %902 = vmatmul.mubr.msk.f32.vlgmr.msra.gmra.mrb[12].mxu1 %vm462_vm2, %v303_v55 }
 0x3a6   : > { %v770_v57 = vpop.f32.mrb[12].mxu1 }
 0x3a7   : > { %v771_v58 = vadd.f32 %v770_v57, %v699_v56  ;;  %v772_v59 = vpop.f32.mrb[13].mxu1 }
 0x3a8   : > { %v773_v60 = vadd.f32 %v772_v59, %v699_v56 }
 0x3a9   : > { %v903_v61 = vmul.f32 -1.442695, %v771_v58 }
 0x3aa   : > { %v904_v62 = vmul.f32 -1.442695, %v773_v60 }
 0x3ab   : > { %972 = vpow2.f32 %v903_v61 }
 0x3ac   : > { %974 = vpow2.f32 %v904_v62 }
 0x3b5   : > { %v973_v63 = vpop.eup %972 }
 0x3b6   : > { %v975_v2 = vpop.eup %974  ;;  %v781_v4 = vadd.f32 1.0, %v973_v63 }
 0x3b7   : > { %v782_v6 = vadd.f32 1.0, %v975_v2 }
 0x3b8   : > { %976 = vrcp.f32 %v781_v4 }
 0x3b9   : > { %978 = vrcp.f32 %v782_v6 }
 0x3c2   : > { %v977_v3 = vpop.eup %976 }
 0x3c3   : > { %v979_v7 = vpop.eup %978 }
 0x3c4   : > { %v789_v5 = vcombine.low %v977_v3, %v979_v7 }
 0x3c6   : > { %791 = vst [vmem:[%s289_s26] sm:$0xff] %v789_v5 }
 0x3c7 PF: > { %s16_s23 = sadd.s32 1, %s1002_s23   ;;  %s1185_s21 = smov %s998_s22 }
 0x3c8   : > { %p13_p5 = scmp.ge.s32.totalorder %s16_s23, 4   ;;  %s1186_s22 = smov %s1188_s24 }
 0x3ca   :  { %15 = sbr.rel (!%p13_p5) target bundleno = 2 (0x2), region = 74 }

</bundles_post_ra>
